<compile_context>
chip_gen: v5e
topology: v5e:2x2
jax: 0.10.0
libtpu: 0.0.40
codegen_flags: <defaults>
</compile_context>

<pallas_src>
import functools

import jax
import jax.numpy as jnp
from jax.experimental import pallas as pl
from jax.experimental.pallas import tpu as pltpu


_SAMPLES_PER_ROW = 32                    # 32 samples * 4 features = 128 lanes
_SAMPLE_ALIGN = 8 * _SAMPLES_PER_ROW     # 256: 8 sublanes of packed rows


def _round_up(n: int, m: int) -> int:
    return ((n + m - 1) // m) * m


def irisnet_kernel(x_ref, w1_ref, b1_ref, w2_ref, b2_ref, o_ref):
    """One batch tile of IrisNet.

    x_ref : [TBR, 128] f32   -- 32 samples per row, 4 features each (packed)
    w1_ref: [128, 320] bf16  -- kron(I_32, W1^T)
    b1_ref: [1, 320]   f32   -- tile(b1, 32)
    w2_ref: [320, 96]  bf16  -- kron(I_32, W2^T)
    b2_ref: [1, 96]    f32   -- tile(b2, 32)
    o_ref : [TBR, 96]  f32   -- 32 samples per row, 3 logits each (packed)
    """
    x = x_ref[...].astype(jnp.bfloat16)
    h = jnp.dot(x, w1_ref[...], preferred_element_type=jnp.float32)   # [TBR, 320]
    h = jnp.maximum(h + b1_ref[...], 0.0)                              # bias + ReLU
    y = jnp.dot(h.astype(jnp.bfloat16), w2_ref[...],
                preferred_element_type=jnp.float32)                    # [TBR, 96]
    o_ref[...] = y + b2_ref[...]


@functools.partial(jax.jit, static_argnames=("block_b",))
def irisnet_forward(x, w1, b1, w2, b2, *, block_b=65536):
    """IrisNet forward: relu(x @ w1.T + b1) @ w2.T + b2.

    x:  [B, 4] f32
    w1: [10, 4], b1: [10]   (PyTorch nn.Linear layout)
    w2: [3, 10], b2: [3]
    returns [B, 3] f32
    """
    B, in_dim = x.shape
    assert in_dim == 4
    out_dim = w2.shape[0]

    # ---- batch tiling: pad only to 256 samples, not to the tile size -------
    b_pad_min = _round_up(B, _SAMPLE_ALIGN)
    n_steps = pl.cdiv(b_pad_min, max(block_b, _SAMPLE_ALIGN))
    if b_pad_min >= 2 * _SAMPLE_ALIGN:
        n_steps = max(n_steps, 2)        # v7x: feed both TensorCores
        n_steps += n_steps % 2           # even step count -> balanced TC split
    tb = _round_up(pl.cdiv(b_pad_min, n_steps), _SAMPLE_ALIGN)   # samples/step
    bp = tb * n_steps
    tbr = tb // _SAMPLES_PER_ROW         # packed rows per step

    # ---- pack operands (no transpose, no extra HBM pass over x) ------------
    if bp != B:
        x = jnp.pad(x, ((0, bp - B), (0, 0)))
    x_packed = x.reshape(bp // _SAMPLES_PER_ROW, _SAMPLES_PER_ROW * in_dim)

    eye = jnp.eye(_SAMPLES_PER_ROW, dtype=jnp.float32)
    w1bd = jnp.kron(eye, w1.T.astype(jnp.float32)).astype(jnp.bfloat16)  # [128, 320]
    w2bd = jnp.kron(eye, w2.T.astype(jnp.float32)).astype(jnp.bfloat16)  # [320, 96]
    b1bd = jnp.tile(b1.astype(jnp.float32), _SAMPLES_PER_ROW).reshape(1, -1)
    b2bd = jnp.tile(b2.astype(jnp.float32), _SAMPLES_PER_ROW).reshape(1, -1)

    out_packed = pl.pallas_call(
        irisnet_kernel,
        out_shape=jax.ShapeDtypeStruct(
            (bp // _SAMPLES_PER_ROW, _SAMPLES_PER_ROW * out_dim), jnp.float32),
        grid=(n_steps,),
        in_specs=[
            pl.BlockSpec((tbr, _SAMPLES_PER_ROW * in_dim), lambda i: (i, 0)),
            pl.BlockSpec(w1bd.shape, lambda i: (0, 0)),   # resident in VMEM
            pl.BlockSpec(b1bd.shape, lambda i: (0, 0)),   # resident
            pl.BlockSpec(w2bd.shape, lambda i: (0, 0)),   # resident
            pl.BlockSpec(b2bd.shape, lambda i: (0, 0)),   # resident
        ],
        out_specs=pl.BlockSpec((tbr, _SAMPLES_PER_ROW * out_dim),
                               lambda i: (i, 0)),
        compiler_params=pltpu.CompilerParams(
            dimension_semantics=("parallel",),
            vmem_limit_bytes=32 * 1024 * 1024),
    )(x_packed, w1bd, b1bd, w2bd, b2bd)

    # [bp/32, 96] -> [bp, 3] is a free contiguous reshape; slice off padding.
    return out_packed.reshape(bp, out_dim)[:B]


def irisnet_forward_xla(x, w1, b1, w2, b2):
    # Plain-XLA reference path (and the better choice for tiny batches).
    return jnp.maximum(x @ w1.T + b1, 0.0) @ w2.T + b2


def init_params(key):
    # Deterministic init mimicking nn.Linear's U(-1/sqrt(fan_in), 1/sqrt(fan_in)).
    k1, k2, k3, k4 = jax.random.split(key, 4)
    lim1 = 1.0 / jnp.sqrt(4.0)
    lim2 = 1.0 / jnp.sqrt(10.0)
    w1 = jax.random.uniform(k1, (10, 4), jnp.float32, -lim1, lim1)   # [out, in]
    b1 = jax.random.uniform(k2, (10,), jnp.float32, -lim1, lim1)
    w2 = jax.random.uniform(k3, (3, 10), jnp.float32, -lim2, lim2)   # [out, in]
    b2 = jax.random.uniform(k4, (3,), jnp.float32, -lim2, lim2)
    return w1, b1, w2, b2


if __name__ == "__main__":
    key = jax.random.PRNGKey(0)
    kx, kp = jax.random.split(key)
    w1, b1, w2, b2 = init_params(kp)

    # Tiny deployment-style batch (grid=(1,), batch padded to one 256-sample tile).
    B = 8
    x = jax.random.normal(kx, (B, 4), jnp.float32)
    out = jax.block_until_ready(irisnet_forward(x, w1, b1, w2, b2))
    ref = irisnet_forward_xla(x, w1, b1, w2, b2)
    assert out.shape == (B, 3)
    assert jnp.allclose(out, ref, atol=2e-2, rtol=2e-2)

    # Multi-step check (grid=(4,)) to exercise the batch pipeline / even split.
    B2 = 1024
    x2 = jax.random.normal(kx, (B2, 4), jnp.float32)
    out2 = jax.block_until_ready(irisnet_forward(x2, w1, b1, w2, b2, block_b=256))
    ref2 = irisnet_forward_xla(x2, w1, b1, w2, b2)
    assert out2.shape == (B2, 3)
    assert jnp.allclose(out2, ref2, atol=2e-2, rtol=2e-2)

    print("KERNEL_OK")
</pallas_src>

<mosaic_0001>
module attributes {stable_mosaic.version = 11 : i64} {
  func.func @irisnet_kernel(%arg0: i32, %arg1: memref<8x128xf32, #tpu.memory_space<vmem>>, %arg2: memref<128x320xbf16, #tpu.memory_space<vmem>>, %arg3: memref<1x320xf32, #tpu.memory_space<vmem>>, %arg4: memref<320x96xbf16, #tpu.memory_space<vmem>>, %arg5: memref<1x96xf32, #tpu.memory_space<vmem>>, %arg6: memref<8x96xf32, #tpu.memory_space<vmem>>) attributes {dimension_semantics = [#tpu.dimension_semantics<parallel>], iteration_bounds = array<i64: 1>, scalar_prefetch = 0 : i64, scratch_operands = 0 : i64, tpu.core_type = #tpu.core_type<tc>, window_params = [{transform_indices = @transform_0, window_bounds = array<i64: 8, 128>}, {pipeline_mode = #tpu.pipeline_mode<synchronous>, transform_indices = @transform_1, window_bounds = array<i64: 128, 320>}, {pipeline_mode = #tpu.pipeline_mode<synchronous>, transform_indices = @transform_2, window_bounds = array<i64: 1, 320>}, {pipeline_mode = #tpu.pipeline_mode<synchronous>, transform_indices = @transform_3, window_bounds = array<i64: 320, 96>}, {pipeline_mode = #tpu.pipeline_mode<synchronous>, transform_indices = @transform_4, window_bounds = array<i64: 1, 96>}, {transform_indices = @transform_5, window_bounds = array<i64: 8, 96>}]} {
    %c0 = arith.constant 0 : index
    %c0_0 = arith.constant 0 : index
    %0 = vector.load %arg1[%c0, %c0_0] : memref<8x128xf32, #tpu.memory_space<vmem>>, vector<8x128xf32>
    %1 = arith.truncf %0 : vector<8x128xf32> to vector<8x128xbf16>
    %c0_1 = arith.constant 0 : index
    %c0_2 = arith.constant 0 : index
    %2 = vector.load %arg2[%c0_1, %c0_2] : memref<128x320xbf16, #tpu.memory_space<vmem>>, vector<128x320xbf16>
    %cst = arith.constant dense<0.000000e+00> : vector<8x320xf32>
    %3 = tpu.matmul %1, %2, %cst {dimension_numbers = #tpu.dot_dimension_numbers<[1], [0], [0], [1], [0, 0, 1, 1], [], []>} : vector<8x128xbf16>, vector<128x320xbf16>, vector<8x320xf32> -> vector<8x320xf32>
    %c0_3 = arith.constant 0 : index
    %c0_4 = arith.constant 0 : index
    %4 = vector.load %arg3[%c0_3, %c0_4] : memref<1x320xf32, #tpu.memory_space<vmem>>, vector<1x320xf32>
    %5 = vector.broadcast %4 : vector<1x320xf32> to vector<8x320xf32>
    %6 = arith.addf %3, %5 : vector<8x320xf32>
    %cst_5 = arith.constant 0.000000e+00 : f32
    %7 = vector.broadcast %cst_5 : f32 to vector<8x320xf32>
    %8 = arith.maximumf %6, %7 : vector<8x320xf32>
    %9 = arith.truncf %8 : vector<8x320xf32> to vector<8x320xbf16>
    %c0_6 = arith.constant 0 : index
    %c0_7 = arith.constant 0 : index
    %10 = vector.load %arg4[%c0_6, %c0_7] : memref<320x96xbf16, #tpu.memory_space<vmem>>, vector<320x96xbf16>
    %cst_8 = arith.constant dense<0.000000e+00> : vector<8x96xf32>
    %11 = tpu.matmul %9, %10, %cst_8 {dimension_numbers = #tpu.dot_dimension_numbers<[1], [0], [0], [1], [0, 0, 1, 1], [], []>} : vector<8x320xbf16>, vector<320x96xbf16>, vector<8x96xf32> -> vector<8x96xf32>
    %c0_9 = arith.constant 0 : index
    %c0_10 = arith.constant 0 : index
    %12 = vector.load %arg5[%c0_9, %c0_10] : memref<1x96xf32, #tpu.memory_space<vmem>>, vector<1x96xf32>
    %13 = vector.broadcast %12 : vector<1x96xf32> to vector<8x96xf32>
    %14 = arith.addf %11, %13 : vector<8x96xf32>
    %c0_11 = arith.constant 0 : index
    %c0_12 = arith.constant 0 : index
    %15 = vector.load %arg6[%c0_11, %c0_12] : memref<8x96xf32, #tpu.memory_space<vmem>>, vector<8x96xf32>
    tpu.vector_store %arg6[%c0_11, %c0_12], %14 {strides = array<i32>} : memref<8x96xf32, #tpu.memory_space<vmem>>, vector<8x96xf32>,
    return
  }
  func.func @transform_0(%arg0: i32) -> (i32, i32) {
    %c0_i32 = arith.constant 0 : i32
    %c0_i32_0 = arith.constant 0 : i32
    return %arg0, %c0_i32 : i32, i32
  }
  func.func @transform_1(%arg0: i32) -> (i32, i32) {
    %c0_i32 = arith.constant 0 : i32
    %c0_i32_0 = arith.constant 0 : i32
    %c0_i32_1 = arith.constant 0 : i32
    return %c0_i32, %c0_i32_0 : i32, i32
  }
  func.func @transform_2(%arg0: i32) -> (i32, i32) {
    %c0_i32 = arith.constant 0 : i32
    %c0_i32_0 = arith.constant 0 : i32
    %c0_i32_1 = arith.constant 0 : i32
    return %c0_i32, %c0_i32_0 : i32, i32
  }
  func.func @transform_3(%arg0: i32) -> (i32, i32) {
    %c0_i32 = arith.constant 0 : i32
    %c0_i32_0 = arith.constant 0 : i32
    %c0_i32_1 = arith.constant 0 : i32
    return %c0_i32, %c0_i32_0 : i32, i32
  }
  func.func @transform_4(%arg0: i32) -> (i32, i32) {
    %c0_i32 = arith.constant 0 : i32
    %c0_i32_0 = arith.constant 0 : i32
    %c0_i32_1 = arith.constant 0 : i32
    return %c0_i32, %c0_i32_0 : i32, i32
  }
  func.func @transform_5(%arg0: i32) -> (i32, i32) {
    %c0_i32 = arith.constant 0 : i32
    %c0_i32_0 = arith.constant 0 : i32
    return %arg0, %c0_i32 : i32, i32
  }
}

</mosaic_0001>

<bundles_post_ra>
// kernel: tile.13
= control target key start
LH: loop header
LB: loop body
LE: loop exit
PB: predicated region body
PF: predicated region fallthrough
CT: control target
= control target key end

     0   :  { %s40_s0 = inlined_call_operand.vmem [shape: f32[10], index: 0, kind: input, shape index: {}]   ;;  %s41_s1 = inlined_call_operand.vmem [shape: f32[32,10], index: 1, kind: output, shape index: {}]  }
   0x1   :  { %v4_v0 = vld [vmem:[%s40_s0] ss:$0 sm:$0xff] }
   0x2   :  { %5 = vst [vmem:[%s41_s1] sm:$0xff] %v4_v0 }
   0x3   :  { %12 = vst [vmem:[%s41_s1 + $0x8] sm:$0xff] %v4_v0 }
   0x4   :  { %13 = vst [vmem:[%s41_s1 + $0x10] sm:$0xff] %v4_v0 }
   0x5   :  { %14 = vst [vmem:[%s41_s1 + $0x18] sm:$0xff] %v4_v0 }

// kernel: tile.14
= control target key start
LH: loop header
LB: loop body
LE: loop exit
PB: predicated region body
PF: predicated region fallthrough
CT: control target
= control target key end

     0   :  { %vm9_vm0 = vcmask 48128   ;;  %s308_s12 = smov 122   ;;  %s309_s13 = smov 112   ;;  %vm23_vm1 = vcmask 64512   ;;  %vm3_vm2 = vcmask 80896   ;;  %vm13_vm3 = vcmask 31744   ;;  %s460_s0 = inlined_call_operand.vmem [shape: f32[32,10], index: 0, kind: input, shape index: {}]   ;;  %s461_s1 = inlined_call_operand.vmem [shape: f32[1,320], index: 1, kind: output, shape index: {}]  }
   0x1   :  { %v242_v0 = vld [vmem:[%s460_s0 + $0x19] sm:$0x1]   ;;  %v246_v3 = vld [vmem:[%s460_s0 + $0x18] sm:$0x1]   ;;  %v244_v4 = vld [vmem:[%s460_s0 + $0xc] sm:$0x1]  }
   0x2   :  { %v243_v1 = vld [vmem:[%s460_s0 + $0x19] sm:$0x1]   ;;  %34 = vrot.lane.b32.xlu1 %v246_v3, %s309_s13  ;;  %v245_v5 = vld [vmem:[%s460_s0 + $0xc] sm:$0x1]   ;;  %v248_v6 = vld [vmem:[%s460_s0 + $0x17] sm:$0x1]  }
   0x3   :  { %v10_v2 = vsel %vm9_vm0, %v243_v1, %v242_v0  ;;  %s310_s20 = smov 102   ;;  %v24_v7 = vsel %vm23_vm1, %v245_v5, %v244_v4  ;;  %v247_v8 = vld [vmem:[%s460_s0 + $0xb] sm:$0x1]   ;;  %s311_s23 = smov 120   ;;  %v249_v9 = vld [vmem:[%s460_s0 + $0xa] sm:$0x1]  }
   0x4   :  { %11 = vrot.lane.b32.xlu0 %v10_v2, %s308_s12  ;;  %47 = vrot.lane.b32.xlu2 %v248_v6, %s310_s20  ;;  %s312_s24 = smov 110   ;;  %s313_s27 = smov 100   ;;  %v250_v10 = vld [vmem:[%s460_s0 + $0x16] sm:$0x1]   ;;  %v251_v11 = vld [vmem:[%s460_s0 + $0x9] sm:$0x1]  }
   0x5   :  { %s314_s3 = smov 92   ;;  %s315_s4 = smov 90   ;;  %v252_v12 = vld [vmem:[%s460_s0 + $0x15] sm:$0x1]   ;;  %v253_v13 = vld [vmem:[%s460_s0 + $0x8] sm:$0x1]  }
   0x6   :  { %s316_s7 = smov 82   ;;  %v254_v14 = vld [vmem:[%s460_s0 + $0x14] sm:$0x1]   ;;  %s317_s12 = smov 80   ;;  %v255_v15 = vld [vmem:[%s460_s0 + $0x7] sm:$0x1]  }
   0x7   :  { %s318_s13 = smov 72   ;;  %s319_s16 = smov 70   ;;  %v256_v16 = vld [vmem:[%s460_s0 + $0x13] sm:$0x1]   ;;  %v257_v17 = vld [vmem:[%s460_s0 + $0x6] sm:$0x1]  }
   0x8   :  { %s320_s21 = smov 62   ;;  %s321_s22 = smov 60   ;;  %v258_v18 = vld [vmem:[%s460_s0 + $0x1f] sm:$0x1]   ;;  %v259_v19 = vld [vmem:[%s460_s0 + $0x12] sm:$0x1]  }
   0x9   :  { %s322_s25 = smov 54   ;;  %v260_v20 = vld [vmem:[%s460_s0 + $0x5] sm:$0x1]   ;;  %s323_s30 = smov 52   ;;  %v261_v21 = vld [vmem:[%s460_s0 + $0x1e] sm:$0x1]  }
   0xa   :  { %41 = vrot.lane.b32.xlu1 %v247_v8, %s312_s24  ;;  %s324_s2 = smov 50   ;;  %s325_s5 = smov 44   ;;  %v262_v22 = vld [vmem:[%s460_s0 + $0x11] sm:$0x1]   ;;  %v263_v23 = vld [vmem:[%s460_s0 + $0x4] sm:$0x1]  }
   0xb   :  { %s326_s10 = smov 42   ;;  %s327_s11 = smov 40   ;;  %v264_v24 = vld [vmem:[%s460_s0 + $0x1d] sm:$0x1]   ;;  %v265_v25 = vld [vmem:[%s460_s0 + $0x10] sm:$0x1]  }
   0xc   :  { %25 = vrot.lane.b32.xlu0 %v24_v7, %s311_s23  ;;  %54 = vrot.lane.b32.xlu2 %v249_v9, %s313_s27  ;;  %s328_s14 = smov 34   ;;  %v266_v26 = vld [vmem:[%s460_s0 + $0x3] sm:$0x1]   ;;  %s329_s19 = smov 32   ;;  %v267_v27 = vld [vmem:[%s460_s0 + $0x1c] sm:$0x1]  }
   0xd   :  { %s330_s20 = smov 30   ;;  %s331_s23 = smov 24   ;;  %v268_v28 = vld [vmem:[%s460_s0 + $0xf] sm:$0x1]   ;;  %v269_v29 = vld [vmem:[%s460_s0 + $0x2] sm:$0x1]  }
   0xe   :  { %s332_s28 = smov 22   ;;  %s333_s29 = smov 20   ;;  %v270_v30 = vld [vmem:[%s460_s0 + $0x1b] sm:$0x1]   ;;  %v271_v31 = vld [vmem:[%s460_s0 + $0xe] sm:$0x1]  }
   0xf   :  { %v272_v32 = vld [vmem:[%s460_s0 + $0x1] sm:$0x1]   ;;  %s335_s8 = smov 12   ;;  %s336_s9 = smov 10   ;;  %v273_v33 = vld [vmem:[%s460_s0 + $0x1a] sm:$0x1]  }
  0x10   :  { %v274_v34 = vld [vmem:[%s460_s0 + $0xd] sm:$0x1]   ;;  %s338_s15 = smov 2   ;;  %v2_v35 = vld [vmem:[%s460_s0] sm:$0x1]   ;;  %vm16_vm4 = vcmask 1048528  }
  0x11   :  { %4 = vst.msk [vmem:[#allocation0] sm:$0x1] %vm3_vm2, %v2_v35   ;;  %vm27_vm5 = vcmask 15360   ;;  %vm30_vm6 = vcmask 1048512   ;;  %vm36_vm7 = vcmask 999296   ;;  %vm43_vm8 = vcmask 982896  }
  0x12   :  { %67 = vrot.lane.b32.xlu1 %v251_v11, %s315_s4  ;;  %vm49_vm9 = vcmask 917296   ;;  %vm56_vm10 = vcmask 900896   ;;  %vm114_vm11 = vcmask 523696   ;;  %vm62_vm12 = vcmask 835296  }
  0x13   :  { %vm69_vm13 = vcmask 818896   ;;  %vm75_vm14 = vcmask 753296   ;;  %vm134_vm15 = vcmask 441696   ;;  %vm82_vm0 = vcmask 736896  }
  0x14   :  { %60 = vrot.lane.b32.xlu0 %v250_v10, %s314_s3  ;;  %73 = vrot.lane.b32.xlu2 %v252_v12, %s316_s7  ;;  %s334_s3 = smov 14   ;;  %vm88_vm1 = vcmask 671296   ;;  %vm95_vm2 = vcmask 654896  }
  0x1a   :  { %86 = vrot.lane.b32.xlu1 %v254_v14, %s318_s13 }
  0x1c   :  { %80 = vrot.lane.b32.xlu0 %v253_v13, %s317_s12  ;;  %93 = vrot.lane.b32.xlu2 %v255_v15, %s319_s16  ;;  %s337_s12 = smov 4  }
  0x22   :  { %106 = vrot.lane.b32.xlu1 %v257_v17, %s321_s22 }
  0x24   :  { %99 = vrot.lane.b32.xlu0 %v256_v16, %s320_s21  ;;  %112 = vrot.lane.b32.xlu2 %v258_v18, %s322_s25 }
  0x2a   :  { %126 = vrot.lane.b32.xlu1 %v260_v20, %s324_s2 }
  0x2c   :  { %119 = vrot.lane.b32.xlu0 %v259_v19, %s323_s30  ;;  %132 = vrot.lane.b32.xlu2 %v261_v21, %s325_s5 }
  0x32   :  { %146 = vrot.lane.b32.xlu1 %v263_v23, %s327_s11 }
  0x34   :  { %139 = vrot.lane.b32.xlu0 %v262_v22, %s326_s10  ;;  %152 = vrot.lane.b32.xlu2 %v264_v24, %s328_s14 }
  0x3a   :  { %166 = vrot.lane.b32.xlu1 %v266_v26, %s330_s20 }
  0x3c   :  { %159 = vrot.lane.b32.xlu0 %v265_v25, %s329_s19  ;;  %172 = vrot.lane.b32.xlu2 %v267_v27, %s331_s23 }
  0x42   :  { %186 = vrot.lane.b32.xlu1 %v269_v29, %s333_s29 }
  0x44   :  { %179 = vrot.lane.b32.xlu0 %v268_v28, %s332_s28  ;;  %192 = vrot.lane.b32.xlu2 %v270_v30, %s334_s3 }
  0x4a   :  { %206 = vrot.lane.b32.xlu1 %v272_v32, %s336_s9 }
  0x4c   :  { %199 = vrot.lane.b32.xlu0 %v271_v31, %s335_s8  ;;  %212 = vrot.lane.b32.xlu2 %v273_v33, %s337_s12 }
  0x54   :  { %219 = vrot.lane.b32.xlu0 %v274_v34, %s338_s15 }
  0x5e   :  { %v48_v36 = vpop.permute.xlu2 %47  }
  0x66   :  { %v55_v37 = vpop.permute.xlu2 %54  }
  0x6e   :  { %v74_v38 = vpop.permute.xlu2 %73  }
  0x74   :  { %v35_v40 = vpop.permute.xlu1 %34  }
  0x76   :  { %v12_v39 = vpop.permute.xlu0 %11   ;;  %v94_v41 = vpop.permute.xlu2 %93  }
  0x77   :  { %15 = vst.msk [vmem:[#allocation0 + $0x10] sm:$0x1] %vm13_vm3, %v12_v39   ;;  %vm154_vm3 = vcmask 359696  }
  0x78   :  { %18 = vst.msk [vmem:[#allocation0 + $0x8] sm:$0x1] %vm16_vm4, %v12_v39   ;;  %vm101_vm4 = vcmask 589296  }
  0x7c   :  { %v42_v43 = vpop.permute.xlu1 %41  }
  0x7e   :  { %v26_v42 = vpop.permute.xlu0 %25   ;;  %v113_v44 = vpop.permute.xlu2 %112  }
  0x7f   :  { %29 = vst.msk [vmem:[#allocation0 + $0x8] sm:$0x1] %vm27_vm5, %v26_v42   ;;  %vm108_vm5 = vcmask 572896  }
  0x80   :  { %31 = vst.msk [vmem:[#allocation0] sm:$0x1] %vm30_vm6, %v26_v42   ;;  %vm174_vm6 = vcmask 277696  }
  0x81   :  { %38 = vst.msk [vmem:[#allocation0 + $0x8] sm:$0x1] %vm36_vm7, %v35_v40   ;;  %vm121_vm7 = vcmask 507296  }
  0x82   :  { %44 = vst.msk [vmem:[#allocation0] sm:$0x1] %vm43_vm8, %v42_v43   ;;  %vm128_vm8 = vcmask 490896  }
  0x83   :  { %51 = vst.msk [vmem:[#allocation0 + $0x8] sm:$0x1] %vm49_vm9, %v48_v36   ;;  %vm194_vm9 = vcmask 195696  }
  0x84   :  { %57 = vst.msk [vmem:[#allocation0] sm:$0x1] %vm56_vm10, %v55_v37   ;;  %v68_v46 = vpop.permute.xlu1 %67   ;;  %vm141_vm10 = vcmask 425296  }
  0x85   :  { %116 = vst.msk [vmem:[#allocation0 + $0x10] sm:$0x1] %vm114_vm11, %v113_v44   ;;  %vm148_vm11 = vcmask 408896  }
  0x86   :  { %v61_v45 = vpop.permute.xlu0 %60   ;;  %70 = vst.msk [vmem:[#allocation0] sm:$0x1] %vm69_vm13, %v68_v46   ;;  %v133_v47 = vpop.permute.xlu2 %132   ;;  %vm161_vm13 = vcmask 343296  }
  0x87   :  { %64 = vst.msk [vmem:[#allocation0 + $0x8] sm:$0x1] %vm62_vm12, %v61_v45   ;;  %vm214_vm12 = vcmask 113696  }
  0x88   :  { %77 = vst.msk [vmem:[#allocation0 + $0x8] sm:$0x1] %vm75_vm14, %v74_v38   ;;  %vm168_vm14 = vcmask 326896  }
  0x89   :  { %136 = vst.msk [vmem:[#allocation0 + $0x10] sm:$0x1] %vm134_vm15, %v133_v47   ;;  %vm181_vm15 = vcmask 261296  }
  0x8c   :  { %v87_v49 = vpop.permute.xlu1 %86  }
  0x8d   :  { %90 = vst.msk [vmem:[#allocation0 + $0x8] sm:$0x1] %vm88_vm1, %v87_v49   ;;  %vm201_vm1 = vcmask 179296  }
  0x8e   :  { %v81_v48 = vpop.permute.xlu0 %80   ;;  %v153_v50 = vpop.permute.xlu2 %152  }
  0x8f   :  { %83 = vst.msk [vmem:[#allocation0] sm:$0x1] %vm82_vm0, %v81_v48   ;;  %vm188_vm0 = vcmask 244896  }
  0x90   :  { %96 = vst.msk [vmem:[#allocation0] sm:$0x1] %vm95_vm2, %v94_v41   ;;  %vm208_vm2 = vcmask 162896  }
  0x91   :  { %156 = vst.msk [vmem:[#allocation0 + $0x10] sm:$0x1] %vm154_vm3, %v153_v50   ;;  %vm221_vm3 = vcmask 97296  }
  0x94   :  { %v107_v52 = vpop.permute.xlu1 %106  }
  0x95   :  { %109 = vst.msk [vmem:[#allocation0] sm:$0x1] %vm108_vm5, %v107_v52  }
  0x96   :  { %v100_v51 = vpop.permute.xlu0 %99   ;;  %v173_v53 = vpop.permute.xlu2 %172  }
  0x97   :  { %103 = vst.msk [vmem:[#allocation0 + $0x8] sm:$0x1] %vm101_vm4, %v100_v51  }
  0x98   :  { %176 = vst.msk [vmem:[#allocation0 + $0x10] sm:$0x1] %vm174_vm6, %v173_v53  }
  0x9c   :  { %v127_v55 = vpop.permute.xlu1 %126  }
  0x9d   :  { %129 = vst.msk [vmem:[#allocation0] sm:$0x1] %vm128_vm8, %v127_v55  }
  0x9e   :  { %v120_v54 = vpop.permute.xlu0 %119   ;;  %v193_v56 = vpop.permute.xlu2 %192  }
  0x9f   :  { %123 = vst.msk [vmem:[#allocation0 + $0x8] sm:$0x1] %vm121_vm7, %v120_v54  }
  0xa0   :  { %196 = vst.msk [vmem:[#allocation0 + $0x10] sm:$0x1] %vm194_vm9, %v193_v56  }
  0xa4   :  { %v147_v58 = vpop.permute.xlu1 %146  }
  0xa5   :  { %149 = vst.msk [vmem:[#allocation0] sm:$0x1] %vm148_vm11, %v147_v58  }
  0xa6   :  { %v140_v57 = vpop.permute.xlu0 %139   ;;  %v213_v59 = vpop.permute.xlu2 %212  }
  0xa7   :  { %143 = vst.msk [vmem:[#allocation0 + $0x8] sm:$0x1] %vm141_vm10, %v140_v57  }
  0xa8   :  { %216 = vst.msk [vmem:[#allocation0 + $0x10] sm:$0x1] %vm214_vm12, %v213_v59  }
  0xac   :  { %v167_v61 = vpop.permute.xlu1 %166  }
  0xad   :  { %169 = vst.msk [vmem:[#allocation0] sm:$0x1] %vm168_vm14, %v167_v61  }
  0xae   :  { %v160_v60 = vpop.permute.xlu0 %159  }
  0xaf   :  { %163 = vst.msk [vmem:[#allocation0 + $0x8] sm:$0x1] %vm161_vm13, %v160_v60   ;;  %v237_v62 = vld [vmem:[#allocation0 + $0x10] sm:$0x1] }
  0xb0   :  { %276 = vst [vmem:[%s461_s1 + $0x2] sm:$0x1] %v237_v62 }
  0xb4   :  { %v187_v0 = vpop.permute.xlu1 %186  }
  0xb5   :  { %189 = vst.msk [vmem:[#allocation0] sm:$0x1] %vm188_vm0, %v187_v0  }
  0xb6   :  { %v180_v63 = vpop.permute.xlu0 %179  }
  0xb7   :  { %183 = vst.msk [vmem:[#allocation0 + $0x8] sm:$0x1] %vm181_vm15, %v180_v63  }
  0xbc   :  { %v207_v2 = vpop.permute.xlu1 %206  }
  0xbd   :  { %209 = vst.msk [vmem:[#allocation0] sm:$0x1] %vm208_vm2, %v207_v2  }
  0xbe   :  { %v200_v1 = vpop.permute.xlu0 %199  }
  0xbf   :  { %203 = vst.msk [vmem:[#allocation0 + $0x8] sm:$0x1] %vm201_vm1, %v200_v1  }
  0xc4   :  { %v226_v4 = vld [vmem:[#allocation0] sm:$0x1] }
  0xc5   :  { %229 = vst [vmem:[%s461_s1] sm:$0x1] %v226_v4 }
  0xc6   :  { %v220_v3 = vpop.permute.xlu0 %219  }
  0xc7   :  { %223 = vst.msk [vmem:[#allocation0 + $0x8] sm:$0x1] %vm221_vm3, %v220_v3  }
  0xce   :  { %v231_v5 = vld [vmem:[#allocation0 + $0x8] sm:$0x1] }
  0xcf   :  { %275 = vst [vmem:[%s461_s1 + $0x1] sm:$0x1] %v231_v5 }

// kernel: tile.18
= control target key start
LH: loop header
LB: loop body
LE: loop exit
PB: predicated region body
PF: predicated region fallthrough
CT: control target
= control target key end

     0   :  { %s40_s0 = inlined_call_operand.vmem [shape: f32[3], index: 0, kind: input, shape index: {}]   ;;  %s41_s1 = inlined_call_operand.vmem [shape: f32[32,3], index: 1, kind: output, shape index: {}]  }
   0x1   :  { %v4_v0 = vld [vmem:[%s40_s0] ss:$0 sm:$0xff] }
   0x2   :  { %5 = vst [vmem:[%s41_s1] sm:$0xff] %v4_v0 }
   0x3   :  { %12 = vst [vmem:[%s41_s1 + $0x8] sm:$0xff] %v4_v0 }
   0x4   :  { %13 = vst [vmem:[%s41_s1 + $0x10] sm:$0xff] %v4_v0 }
   0x5   :  { %14 = vst [vmem:[%s41_s1 + $0x18] sm:$0xff] %v4_v0 }

// kernel: tile.19
= control target key start
LH: loop header
LB: loop body
LE: loop exit
PB: predicated region body
PF: predicated region fallthrough
CT: control target
= control target key end

     0   :  { %s259_s10 = smov 93   ;;  %s260_s11 = smov 87   ;;  %vm3_vm0 = vcmask 23552   ;;  %vm9_vm1 = vcmask 786152   ;;  %vm15_vm2 = vcmask 761552   ;;  %vm21_vm3 = vcmask 736952   ;;  %s399_s0 = inlined_call_operand.vmem [shape: f32[32,3], index: 0, kind: input, shape index: {}]   ;;  %s400_s1 = inlined_call_operand.vmem [shape: f32[1,96], index: 1, kind: output, shape index: {}]  }
   0x1   :  { %v197_v0 = vld [vmem:[%s399_s0 + $0x1f] sm:$0x1]   ;;  %v199_v1 = vld [vmem:[%s399_s0 + $0x1d] sm:$0x1]   ;;  %v201_v2 = vld [vmem:[%s399_s0 + $0x1b] sm:$0x1]  }
   0x2   :  { %7 = vrot.lane.b32.xlu0 %v197_v0, %s259_s10  ;;  %19 = vrot.lane.b32.xlu1 %v199_v1, %s260_s11  ;;  %s261_s14 = smov 81   ;;  %v198_v3 = vld [vmem:[%s399_s0 + $0x1e] sm:$0x1]   ;;  %v200_v4 = vld [vmem:[%s399_s0 + $0x1c] sm:$0x1]   ;;  %s262_s19 = smov 90  }
   0x3   :  { %31 = vrot.lane.b32.xlu2 %v201_v2, %s261_s14  ;;  %s263_s20 = smov 84   ;;  %v202_v5 = vld [vmem:[%s399_s0 + $0x1a] sm:$0x1]   ;;  %s264_s23 = smov 78   ;;  %v203_v6 = vld [vmem:[%s399_s0 + $0x19] sm:$0x1]  }
   0x4   :  { %v204_v7 = vld [vmem:[%s399_s0 + $0x18] sm:$0x1]   ;;  %s265_s28 = smov 75   ;;  %s266_s29 = smov 72   ;;  %v205_v8 = vld [vmem:[%s399_s0 + $0x17] sm:$0x1]  }
   0x5   :  { %s267_s3 = smov 69   ;;  %v206_v9 = vld [vmem:[%s399_s0 + $0x16] sm:$0x1]   ;;  %v207_v10 = vld [vmem:[%s399_s0 + $0x15] sm:$0x1]   ;;  %s268_s8 = smov 66  }
   0x6   :  { %s269_s9 = smov 63   ;;  %v208_v11 = vld [vmem:[%s399_s0 + $0x14] sm:$0x1]   ;;  %s270_s12 = smov 60   ;;  %v209_v12 = vld [vmem:[%s399_s0 + $0x13] sm:$0x1]  }
   0x7   :  { %v210_v13 = vld [vmem:[%s399_s0 + $0x12] sm:$0x1]   ;;  %s271_s17 = smov 57   ;;  %s272_s18 = smov 54   ;;  %v211_v14 = vld [vmem:[%s399_s0 + $0x11] sm:$0x1]  }
   0x8   :  { %s273_s21 = smov 51   ;;  %v212_v15 = vld [vmem:[%s399_s0 + $0x10] sm:$0x1]   ;;  %v213_v16 = vld [vmem:[%s399_s0 + $0xf] sm:$0x1]   ;;  %s274_s26 = smov 48  }
   0x9   :  { %s275_s27 = smov 45   ;;  %v214_v17 = vld [vmem:[%s399_s0 + $0xe] sm:$0x1]   ;;  %s276_s30 = smov 42   ;;  %v215_v18 = vld [vmem:[%s399_s0 + $0xd] sm:$0x1]  }
   0xa   :  { %13 = vrot.lane.b32.xlu0 %v198_v3, %s262_s19  ;;  %25 = vrot.lane.b32.xlu1 %v200_v4, %s263_s20  ;;  %v216_v19 = vld [vmem:[%s399_s0 + $0xc] sm:$0x1]   ;;  %s277_s6 = smov 39   ;;  %s278_s7 = smov 36   ;;  %v217_v20 = vld [vmem:[%s399_s0 + $0xb] sm:$0x1]  }
   0xb   :  { %37 = vrot.lane.b32.xlu2 %v202_v5, %s264_s23  ;;  %s279_s10 = smov 33   ;;  %v218_v21 = vld [vmem:[%s399_s0 + $0xa] sm:$0x1]   ;;  %v219_v22 = vld [vmem:[%s399_s0 + $0x9] sm:$0x1]   ;;  %s280_s15 = smov 30  }
   0xc   :  { %s281_s16 = smov 27   ;;  %v220_v23 = vld [vmem:[%s399_s0 + $0x8] sm:$0x1]   ;;  %s282_s19 = smov 24   ;;  %v221_v24 = vld [vmem:[%s399_s0 + $0x7] sm:$0x1]  }
   0xd   :  { %v222_v25 = vld [vmem:[%s399_s0 + $0x6] sm:$0x1]   ;;  %s283_s24 = smov 21   ;;  %s284_s25 = smov 18   ;;  %v223_v26 = vld [vmem:[%s399_s0 + $0x5] sm:$0x1]  }
   0xe   :  { %v224_v27 = vld [vmem:[%s399_s0 + $0x4] sm:$0x1]   ;;  %v225_v28 = vld [vmem:[%s399_s0 + $0x3] sm:$0x1]   ;;  %s286_s4 = smov 12   ;;  %s287_s5 = smov 9  }
   0xf   :  { %v226_v29 = vld [vmem:[%s399_s0 + $0x2] sm:$0x1]   ;;  %v227_v30 = vld [vmem:[%s399_s0 + $0x1] sm:$0x1]   ;;  %s289_s11 = smov 3   ;;  %vm27_vm4 = vcmask 712352  }
  0x10   :  { %v2_v31 = vld [vmem:[%s399_s0] sm:$0x1]   ;;  %vm33_vm5 = vcmask 687752   ;;  %vm39_vm6 = vcmask 663152   ;;  %vm45_vm7 = vcmask 638552   ;;  %vm51_vm8 = vcmask 613952  }
  0x11   :  { %4 = vst.msk [vmem:[#allocation0] sm:$0x1] %vm3_vm0, %v2_v31   ;;  %vm57_vm9 = vcmask 589352   ;;  %vm63_vm10 = vcmask 564752   ;;  %vm69_vm11 = vcmask 540152   ;;  %vm75_vm12 = vcmask 515552  }
  0x12   :  { %43 = vrot.lane.b32.xlu0 %v203_v6, %s265_s28  ;;  %49 = vrot.lane.b32.xlu1 %v204_v7, %s266_s29  ;;  %s285_s28 = smov 15   ;;  %vm81_vm13 = vcmask 490952   ;;  %vm87_vm14 = vcmask 466352   ;;  %vm93_vm15 = vcmask 441752   ;;  %vm99_vm0 = vcmask 417152  }
  0x13   :  { %55 = vrot.lane.b32.xlu2 %v205_v8, %s267_s3 }
  0x1a   :  { %61 = vrot.lane.b32.xlu0 %v206_v9, %s268_s8  ;;  %67 = vrot.lane.b32.xlu1 %v207_v10, %s269_s9  ;;  %s288_s8 = smov 6  }
  0x1b   :  { %73 = vrot.lane.b32.xlu2 %v208_v11, %s270_s12 }
  0x22   :  { %79 = vrot.lane.b32.xlu0 %v209_v12, %s271_s17  ;;  %85 = vrot.lane.b32.xlu1 %v210_v13, %s272_s18 }
  0x23   :  { %91 = vrot.lane.b32.xlu2 %v211_v14, %s273_s21 }
  0x2a   :  { %97 = vrot.lane.b32.xlu0 %v212_v15, %s274_s26  ;;  %103 = vrot.lane.b32.xlu1 %v213_v16, %s275_s27 }
  0x2b   :  { %109 = vrot.lane.b32.xlu2 %v214_v17, %s276_s30 }
  0x32   :  { %115 = vrot.lane.b32.xlu0 %v215_v18, %s277_s6  ;;  %121 = vrot.lane.b32.xlu1 %v216_v19, %s278_s7 }
  0x33   :  { %127 = vrot.lane.b32.xlu2 %v217_v20, %s279_s10 }
  0x3a   :  { %133 = vrot.lane.b32.xlu0 %v218_v21, %s280_s15  ;;  %139 = vrot.lane.b32.xlu1 %v219_v22, %s281_s16 }
  0x3b   :  { %145 = vrot.lane.b32.xlu2 %v220_v23, %s282_s19 }
  0x42   :  { %151 = vrot.lane.b32.xlu0 %v221_v24, %s283_s24  ;;  %157 = vrot.lane.b32.xlu1 %v222_v25, %s284_s25 }
  0x43   :  { %163 = vrot.lane.b32.xlu2 %v223_v26, %s285_s28 }
  0x4a   :  { %169 = vrot.lane.b32.xlu0 %v224_v27, %s286_s4  ;;  %175 = vrot.lane.b32.xlu1 %v225_v28, %s287_s5 }
  0x4b   :  { %181 = vrot.lane.b32.xlu2 %v226_v29, %s288_s8 }
  0x52   :  { %187 = vrot.lane.b32.xlu0 %v227_v30, %s289_s11 }
  0x5d   :  { %v32_v32 = vpop.permute.xlu2 %31  }
  0x65   :  { %v38_v33 = vpop.permute.xlu2 %37  }
  0x6d   :  { %v56_v34 = vpop.permute.xlu2 %55  }
  0x74   :  { %v8_v35 = vpop.permute.xlu0 %7   ;;  %v20_v36 = vpop.permute.xlu1 %19  }
  0x75   :  { %10 = vst.msk [vmem:[#allocation0] sm:$0x1] %vm9_vm1, %v8_v35   ;;  %v74_v37 = vpop.permute.xlu2 %73   ;;  %vm105_vm1 = vcmask 392552  }
  0x7c   :  { %v14_v38 = vpop.permute.xlu0 %13   ;;  %v26_v39 = vpop.permute.xlu1 %25  }
  0x7d   :  { %16 = vst.msk [vmem:[#allocation0] sm:$0x1] %vm15_vm2, %v14_v38   ;;  %v92_v40 = vpop.permute.xlu2 %91   ;;  %vm111_vm2 = vcmask 367952  }
  0x7e   :  { %22 = vst.msk [vmem:[#allocation0] sm:$0x1] %vm21_vm3, %v20_v36   ;;  %vm117_vm3 = vcmask 343352  }
  0x7f   :  { %28 = vst.msk [vmem:[#allocation0] sm:$0x1] %vm27_vm4, %v26_v39   ;;  %vm123_vm4 = vcmask 318752  }
  0x80   :  { %34 = vst.msk [vmem:[#allocation0] sm:$0x1] %vm33_vm5, %v32_v32   ;;  %vm129_vm5 = vcmask 294152  }
  0x81   :  { %40 = vst.msk [vmem:[#allocation0] sm:$0x1] %vm39_vm6, %v38_v33   ;;  %vm135_vm6 = vcmask 269552  }
  0x84   :  { %v44_v41 = vpop.permute.xlu0 %43   ;;  %v50_v42 = vpop.permute.xlu1 %49  }
  0x85   :  { %46 = vst.msk [vmem:[#allocation0] sm:$0x1] %vm45_vm7, %v44_v41   ;;  %v110_v43 = vpop.permute.xlu2 %109   ;;  %vm141_vm7 = vcmask 244952  }
  0x86   :  { %52 = vst.msk [vmem:[#allocation0] sm:$0x1] %vm51_vm8, %v50_v42   ;;  %vm147_vm8 = vcmask 220352  }
  0x87   :  { %58 = vst.msk [vmem:[#allocation0] sm:$0x1] %vm57_vm9, %v56_v34   ;;  %vm153_vm9 = vcmask 195752  }
  0x8c   :  { %v62_v44 = vpop.permute.xlu0 %61   ;;  %v68_v45 = vpop.permute.xlu1 %67  }
  0x8d   :  { %64 = vst.msk [vmem:[#allocation0] sm:$0x1] %vm63_vm10, %v62_v44   ;;  %v128_v46 = vpop.permute.xlu2 %127   ;;  %vm159_vm10 = vcmask 171152  }
  0x8e   :  { %70 = vst.msk [vmem:[#allocation0] sm:$0x1] %vm69_vm11, %v68_v45   ;;  %vm165_vm11 = vcmask 146552  }
  0x8f   :  { %76 = vst.msk [vmem:[#allocation0] sm:$0x1] %vm75_vm12, %v74_v37   ;;  %vm171_vm12 = vcmask 121952  }
  0x94   :  { %v80_v47 = vpop.permute.xlu0 %79   ;;  %v86_v48 = vpop.permute.xlu1 %85  }
  0x95   :  { %82 = vst.msk [vmem:[#allocation0] sm:$0x1] %vm81_vm13, %v80_v47   ;;  %v146_v49 = vpop.permute.xlu2 %145   ;;  %vm177_vm13 = vcmask 97352  }
  0x96   :  { %88 = vst.msk [vmem:[#allocation0] sm:$0x1] %vm87_vm14, %v86_v48   ;;  %vm183_vm14 = vcmask 72752  }
  0x97   :  { %94 = vst.msk [vmem:[#allocation0] sm:$0x1] %vm93_vm15, %v92_v40   ;;  %vm189_vm15 = vcmask 48152  }
  0x9c   :  { %v98_v50 = vpop.permute.xlu0 %97   ;;  %v104_v51 = vpop.permute.xlu1 %103  }
  0x9d   :  { %100 = vst.msk [vmem:[#allocation0] sm:$0x1] %vm99_vm0, %v98_v50   ;;  %v164_v52 = vpop.permute.xlu2 %163  }
  0x9e   :  { %106 = vst.msk [vmem:[#allocation0] sm:$0x1] %vm105_vm1, %v104_v51  }
  0x9f   :  { %112 = vst.msk [vmem:[#allocation0] sm:$0x1] %vm111_vm2, %v110_v43  }
  0xa4   :  { %v116_v53 = vpop.permute.xlu0 %115   ;;  %v122_v54 = vpop.permute.xlu1 %121  }
  0xa5   :  { %118 = vst.msk [vmem:[#allocation0] sm:$0x1] %vm117_vm3, %v116_v53   ;;  %v182_v55 = vpop.permute.xlu2 %181  }
  0xa6   :  { %124 = vst.msk [vmem:[#allocation0] sm:$0x1] %vm123_vm4, %v122_v54  }
  0xa7   :  { %130 = vst.msk [vmem:[#allocation0] sm:$0x1] %vm129_vm5, %v128_v46  }
  0xac   :  { %v134_v56 = vpop.permute.xlu0 %133   ;;  %v140_v57 = vpop.permute.xlu1 %139  }
  0xad   :  { %136 = vst.msk [vmem:[#allocation0] sm:$0x1] %vm135_vm6, %v134_v56  }
  0xae   :  { %142 = vst.msk [vmem:[#allocation0] sm:$0x1] %vm141_vm7, %v140_v57  }
  0xaf   :  { %148 = vst.msk [vmem:[#allocation0] sm:$0x1] %vm147_vm8, %v146_v49  }
  0xb4   :  { %v152_v58 = vpop.permute.xlu0 %151   ;;  %v158_v59 = vpop.permute.xlu1 %157  }
  0xb5   :  { %154 = vst.msk [vmem:[#allocation0] sm:$0x1] %vm153_vm9, %v152_v58  }
  0xb6   :  { %160 = vst.msk [vmem:[#allocation0] sm:$0x1] %vm159_vm10, %v158_v59  }
  0xb7   :  { %166 = vst.msk [vmem:[#allocation0] sm:$0x1] %vm165_vm11, %v164_v52  }
  0xbc   :  { %v170_v60 = vpop.permute.xlu0 %169   ;;  %v176_v61 = vpop.permute.xlu1 %175  }
  0xbd   :  { %172 = vst.msk [vmem:[#allocation0] sm:$0x1] %vm171_vm12, %v170_v60  }
  0xbe   :  { %178 = vst.msk [vmem:[#allocation0] sm:$0x1] %vm177_vm13, %v176_v61  }
  0xbf   :  { %184 = vst.msk [vmem:[#allocation0] sm:$0x1] %vm183_vm14, %v182_v55  }
  0xc4   :  { %v188_v62 = vpop.permute.xlu0 %187  }
  0xc5   :  { %190 = vst.msk [vmem:[#allocation0] sm:$0x1] %vm189_vm15, %v188_v62  }
  0xcc   :  { %v193_v63 = vld [vmem:[#allocation0] sm:$0x1] }
  0xcd   :  { %196 = vst [vmem:[%s400_s1] sm:$0x1] %v193_v63 }

// kernel: irisnet_forward.1
= control target key start
LH: loop header
LB: loop body
LE: loop exit
PB: predicated region body
PF: predicated region fallthrough
CT: control target
= control target key end

     0   :  { %vm400_vm0 = vcmask 523264   ;;  %vm443_vm1 = vcmask 785408   ;;  %s917_s1 = inlined_call_operand.vmem [shape: bf16[128,320], index: 1, kind: input, shape index: {}]   ;;  %s918_s3 = inlined_call_operand.vmem [shape: bf16[320,96], index: 3, kind: input, shape index: {}]   ;;  %s919_s0 = inlined_call_operand.vmem [shape: f32[8,128], index: 0, kind: input, shape index: {}]   ;;  %s920_s2 = inlined_call_operand.vmem [shape: f32[1,320], index: 2, kind: input, shape index: {}]   ;;  %s921_s4 = inlined_call_operand.vmem [shape: f32[1,96], index: 4, kind: input, shape index: {}]   ;;  %s922_s5 = inlined_call_operand.vmem [shape: f32[8,96], index: 5, kind: output, shape index: {}]  }
   0x1   :  { %v535_v0 = vld [vmem:[%s917_s1 + $0xa8] sm:$0xf]  ;;  %v648_v1 = vld [vmem:[%s917_s1 + $0xb0] sm:$0xf0]  ;;  %v647_v2 = vld [vmem:[%s917_s1 + $0xac] sm:$0xf] }
   0x2   :  { %v536_v3 = vor.u32 %v648_v1, %v535_v0  ;;  %v537_v4 = vld [vmem:[%s917_s1 + $0xb4] sm:$0xf0]  ;;  %v543_v5 = vld [vmem:[%s917_s1 + $0xb0] sm:$0xf]  ;;  %v649_v6 = vld [vmem:[%s917_s1 + $0xb8] sm:$0xf0] }
   0x3   :  { %v540_v7 = vor.u32 %v647_v2, %v537_v4  ;;  %v544_v8 = vor.u32 %v649_v6, %v543_v5  ;;  %v523_v9 = vld [vmem:[%s917_s1 + $0x90] sm:$0xf]  ;;  %v645_v10 = vld [vmem:[%s917_s1 + $0x98] sm:$0xf0]  ;;  %v644_v11 = vld [vmem:[%s917_s1 + $0x94] sm:$0xf] }
   0x4   :  { %191 = vmatpush.bf16.msra.mxu0 %v536_v3  ;;  %v524_v12 = vor.u32 %v645_v10, %v523_v9  ;;  %v525_v13 = vld [vmem:[%s917_s1 + $0x9c] sm:$0xf0]  ;;  %v531_v14 = vld [vmem:[%s917_s1 + $0x98] sm:$0xf]  ;;  %v646_v15 = vld [vmem:[%s917_s1 + $0xa0] sm:$0xf0] }
   0x5   :  { %204 = vmatpush.bf16.msra.mxu1 %v540_v7  ;;  %217 = vmatpush.bf16.msra.mxu2 %v544_v8  ;;  %v528_v16 = vor.u32 %v644_v11, %v525_v13  ;;  %v532_v17 = vor.u32 %v646_v15, %v531_v14  ;;  %v511_v18 = vld [vmem:[%s917_s1 + $0x78] sm:$0xf]  ;;  %v642_v19 = vld [vmem:[%s917_s1 + $0x80] sm:$0xf0]  ;;  %v641_v20 = vld [vmem:[%s917_s1 + $0x7c] sm:$0xf] }
   0x6   :  { %v513_v21 = vld [vmem:[%s917_s1 + $0x84] sm:$0xf0]  ;;  %v519_v22 = vld [vmem:[%s917_s1 + $0x80] sm:$0xf]  ;;  %v643_v23 = vld [vmem:[%s917_s1 + $0x88] sm:$0xf0]  ;;  %v512_v24 = vor.u32 %v642_v19, %v511_v18 }
   0x7   :  { %v516_v25 = vor.u32 %v641_v20, %v513_v21  ;;  %v520_v26 = vor.u32 %v643_v23, %v519_v22  ;;  %v499_v27 = vld [vmem:[%s917_s1 + $0x60] sm:$0xf]  ;;  %v639_v28 = vld [vmem:[%s917_s1 + $0x68] sm:$0xf0]  ;;  %v638_v29 = vld [vmem:[%s917_s1 + $0x64] sm:$0xf] }
   0x8   :  { %192 = vmatpush.bf16.msra.mxu0 %v524_v12  ;;  %v501_v30 = vld [vmem:[%s917_s1 + $0x6c] sm:$0xf0]  ;;  %v507_v31 = vld [vmem:[%s917_s1 + $0x68] sm:$0xf]  ;;  %v640_v32 = vld [vmem:[%s917_s1 + $0x70] sm:$0xf0]  ;;  %v500_v33 = vor.u32 %v639_v28, %v499_v27 }
   0x9   :  { %205 = vmatpush.bf16.msra.mxu1 %v528_v16  ;;  %218 = vmatpush.bf16.msra.mxu2 %v532_v17  ;;  %v504_v34 = vor.u32 %v638_v29, %v501_v30  ;;  %v508_v35 = vor.u32 %v640_v32, %v507_v31  ;;  %v487_v36 = vld [vmem:[%s917_s1 + $0x48] sm:$0xf]  ;;  %v636_v37 = vld [vmem:[%s917_s1 + $0x50] sm:$0xf0]  ;;  %v635_v38 = vld [vmem:[%s917_s1 + $0x4c] sm:$0xf] }
   0xa   :  { %v489_v39 = vld [vmem:[%s917_s1 + $0x54] sm:$0xf0]  ;;  %v495_v40 = vld [vmem:[%s917_s1 + $0x50] sm:$0xf]  ;;  %v637_v41 = vld [vmem:[%s917_s1 + $0x58] sm:$0xf0]  ;;  %v488_v42 = vor.u32 %v636_v37, %v487_v36 }
   0xb   :  { %v475_v43 = vld [vmem:[%s917_s1 + $0x30] sm:$0xf]  ;;  %v492_v44 = vor.u32 %v635_v38, %v489_v39  ;;  %v496_v45 = vor.u32 %v637_v41, %v495_v40  ;;  %v633_v46 = vld [vmem:[%s917_s1 + $0x38] sm:$0xf0]  ;;  %v632_v47 = vld [vmem:[%s917_s1 + $0x34] sm:$0xf] }
   0xc   :  { %193 = vmatpush.bf16.msra.mxu0 %v512_v24  ;;  %v657_v48 = vld [vmem:[%s918_s3 + $0x38] sm:$0xff]  ;;  %v477_v49 = vld [vmem:[%s917_s1 + $0x3c] sm:$0xf0]  ;;  %v634_v51 = vld [vmem:[%s917_s1 + $0x40] sm:$0xf0]  ;;  %v476_v53 = vor.u32 %v633_v46, %v475_v43 }
   0xd   :  { %206 = vmatpush.bf16.msra.mxu1 %v516_v25  ;;  %219 = vmatpush.bf16.msra.mxu2 %v520_v26  ;;  %v483_v50 = vld [vmem:[%s917_s1 + $0x38] sm:$0xf]  ;;  %v656_v52 = vld [vmem:[%s918_s3 + $0x30] sm:$0xff]  ;;  %v480_v54 = vor.u32 %v632_v47, %v477_v49  ;;  %v630_v57 = vld [vmem:[%s917_s1 + $0x20] sm:$0xf0] }
   0xe   :  { %404 = vmatpush.bf16.msra.mxu3 %v657_v48  ;;  %v484_v55 = vor.u32 %v634_v51, %v483_v50  ;;  %v463_v56 = vld [vmem:[%s917_s1 + $0x18] sm:$0xf]  ;;  %v629_v58 = vld [vmem:[%s917_s1 + $0x1c] sm:$0xf]  ;;  %v465_v59 = vld [vmem:[%s917_s1 + $0x24] sm:$0xf0] }
   0xf   :  { %v471_v60 = vld [vmem:[%s917_s1 + $0x20] sm:$0xf]  ;;  %v631_v61 = vld [vmem:[%s917_s1 + $0x28] sm:$0xf0]  ;;  %v464_v63 = vor.u32 %v630_v57, %v463_v56  ;;  %v468_v0 = vor.u32 %v629_v58, %v465_v59  ;;  %v626_v4 = vld [vmem:[%s917_s1 + $0x4] sm:$0xf] }
  0x10   :  { %194 = vmatpush.bf16.msra.mxu0 %v500_v33  ;;  %v655_v62 = vld [vmem:[%s918_s3 + $0x28] sm:$0xff]  ;;  %v472_v1 = vor.u32 %v631_v61, %v471_v60  ;;  %v451_v2 = vld [vmem:[%s917_s1] sm:$0xf]  ;;  %v453_v5 = vld [vmem:[%s917_s1 + $0xc] sm:$0xf0] }
  0x11   :  { %207 = vmatpush.bf16.msra.mxu1 %v504_v34  ;;  %220 = vmatpush.bf16.msra.mxu2 %v508_v35  ;;  %v627_v3 = vld [vmem:[%s917_s1 + $0x8] sm:$0xf0]  ;;  %v459_v6 = vld [vmem:[%s917_s1 + $0x8] sm:$0xf]  ;;  %v628_v7 = vld [vmem:[%s917_s1 + $0x10] sm:$0xf0]  ;;  %v456_v11 = vor.u32 %v626_v4, %v453_v5 }
  0x12   :  { %405 = vmatpush.bf16.msra.mxu3 %v656_v52  ;;  %v654_v8 = vld [vmem:[%s918_s3 + $0x20] sm:$0xff]  ;;  %v452_v9 = vor.u32 %v627_v3, %v451_v2  ;;  %v460_v12 = vor.u32 %v628_v7, %v459_v6  ;;  %v665_v13 = vld [vmem:[%s918_s3 + $0x78] sm:$0xff]  ;;  %v664_v17 = vld [vmem:[%s918_s3 + $0x70] sm:$0xff] }
  0x13   :  { %v21_v10 = vld [vmem:[%s919_s0] sm:$0xff]  ;;  %v669_v14 = vld [vmem:[%s918_s3 + $0x98] sm:$0xff]  ;;  %v652_v18 = vld [vmem:[%s918_s3 + $0x10] sm:$0xff] }
  0x14   :  { %195 = vmatpush.bf16.msra.mxu0 %v488_v42  ;;  %v22_v15 = vpack.c.bf16 %v21_v10, %v21_v10  ;;  %v653_v16 = vld [vmem:[%s918_s3 + $0x18] sm:$0xff]  ;;  %v663_v19 = vld [vmem:[%s918_s3 + $0x68] sm:$0xff]  ;;  %v662_v20 = vld [vmem:[%s918_s3 + $0x60] sm:$0xff] }
  0x15   :  { %208 = vmatpush.bf16.msra.mxu1 %v492_v44  ;;  %221 = vmatpush.bf16.msra.mxu2 %v496_v45  ;;  %v661_v21 = vld [vmem:[%s918_s3 + $0x58] sm:$0xff]  ;;  %v660_v22 = vld [vmem:[%s918_s3 + $0x50] sm:$0xff]  ;;  %v651_v23 = vld [vmem:[%s918_s3 + $0x8] sm:$0xff] }
  0x16   :  { %406 = vmatpush.bf16.msra.mxu3 %v655_v62  ;;  %v659_v24 = vld [vmem:[%s918_s3 + $0x48] sm:$0xff]  ;;  %v668_v25 = vld [vmem:[%s918_s3 + $0x90] sm:$0xff]  ;;  %v650_v26 = vld [vmem:[%s918_s3] sm:$0xff] }
  0x17   :  { %v658_v27 = vld [vmem:[%s918_s3 + $0x40] sm:$0xff]  ;;  %v667_v28 = vld [vmem:[%s918_s3 + $0x88] sm:$0xff] }
  0x18   :  { %196 = vmatpush.bf16.msra.mxu0 %v476_v53  ;;  %v666_v29 = vld [vmem:[%s918_s3 + $0x80] sm:$0xff] }
  0x19   :  { %209 = vmatpush.bf16.msra.mxu1 %v480_v54  ;;  %222 = vmatpush.bf16.msra.mxu2 %v484_v55  ;;  %v55_v30 = vld [vmem:[%s920_s2] sm:$0x7] }
  0x1a   :  { %407 = vmatpush.bf16.msra.mxu3 %v654_v8  ;;  %v57_v31 = vperm.slane %v55_v30, 0  ;;  %v58_v32 = vperm.slane %v55_v30, 1  ;;  %v59_v39 = vperm.slane %v55_v30, 2  ;;  %v670_v50 = vld [vmem:[%s921_s4] ss:$0 sm:$0xff] }
  0x1c   :  { %197 = vmatpush.bf16.msra.mxu0 %v464_v63 }
  0x1d   :  { %210 = vmatpush.bf16.msra.mxu1 %v468_v0  ;;  %223 = vmatpush.bf16.msra.mxu2 %v472_v1 }
  0x1e   :  { %408 = vmatpush.bf16.msra.mxu3 %v653_v16 }
  0x20   :  { %198 = vmatpush.bf16.msra.mxu0 %v452_v9 }
  0x21   :  { %211 = vmatpush.bf16.msra.mxu1 %v456_v11  ;;  %224 = vmatpush.bf16.msra.mxu2 %v460_v12 }
  0x22   :  { %409 = vmatpush.bf16.msra.mxu3 %v652_v18 }
  0x23   :  { %199 = vmatmul.bf16.vlgmr.msra.gmra.mxu0 %v22_v15 }
  0x24   :  { %417 = vmatpush.bf16.msrb.mxu0 %v665_v13  ;;  %212 = vmatmul.bf16.vlgmr.msra.gmra.mxu1 %v22_v15 }
  0x25   :  { %434 = vmatpush.bf16.msrb.mxu1 %v669_v14  ;;  %225 = vmatmul.bf16.vlgmr.msra.gmra.mxu2 %v22_v15 }
  0x26   :  { %410 = vmatpush.bf16.msra.mxu3 %v651_v23 }
  0x28   :  { %418 = vmatpush.bf16.msrb.mxu0 %v664_v17 }
  0x29   :  { %435 = vmatpush.bf16.msrb.mxu1 %v668_v25 }
  0x2a   :  { %411 = vmatpush.bf16.msra.mxu3 %v650_v26 }
  0x2c   :  { %419 = vmatpush.bf16.msrb.mxu0 %v663_v19 }
  0x2d   :  { %436 = vmatpush.bf16.msrb.mxu1 %v667_v28 }
  0x30   :  { %420 = vmatpush.bf16.msrb.mxu0 %v662_v20 }
  0x31   :  { %437 = vmatpush.bf16.msrb.mxu1 %v666_v29 }
  0x34   :  { %421 = vmatpush.bf16.msrb.mxu0 %v661_v21 }
  0x38   :  { %422 = vmatpush.bf16.msrb.mxu0 %v660_v22 }
  0x3c   :  { %423 = vmatpush.bf16.msrb.mxu0 %v659_v24 }
  0x40   :  { %424 = vmatpush.bf16.msrb.mxu0 %v658_v27 }
  0xa0   :  { %v200_v33 = vpop.f32.mrf.mxu0 }
  0xa1   :  { %v201_v34 = vadd.f32 %v200_v33, %v57_v31  ;;  %v213_v35 = vpop.f32.mrf.mxu1 }
  0xa2   :  { %v214_v36 = vadd.f32 %v213_v35, %v58_v32 }
  0xa3   :  { %v230_v37 = vmax.f32 %v201_v34, 0.0 }
  0xa4   :  { %v231_v38 = vmax.f32 %v214_v36, 0.0 }
  0xa5   :  { %v233_v40 = vpack.c.bf16 %v230_v37, %v230_v37 }
  0xa6   :  { %v234_v41 = vpack.c.bf16 %v231_v38, %v231_v38 }
  0xa7   :  { %412 = vmatmul.bf16.vlgmr.msra.gmra.mxu3 %v233_v40 }
  0xa8   :  { %v226_v42 = vpop.f32.mrf.mxu2  ;;  %425 = vmatmul.bf16.vlgmr.msrb.gmra.mxu0 %v234_v41  ;;  %v202_v44 = vpop.f32.mrf.mxu0 }
  0xa9   :  { %v227_v43 = vadd.f32 %v226_v42, %v59_v39  ;;  %v215_v45 = vpop.f32.mrf.mxu1 }
  0xab   :  { %v232_v46 = vmax.f32 %v227_v43, 0.0 }
  0xad   :  { %v235_v47 = vpack.c.bf16 %v232_v46, %v232_v46 }
  0xaf   :  { %625 = vmatmul.msk.bf16.vlgmr.msrb.gmra.mxu1 %vm400_vm0, %v235_v47 }
  0xb0   :  { %v228_v48 = vpop.f32.mrf.mxu2 }
 0x125   :  { %v426_v49 = vpop.f32.mrf.mxu0 }
 0x12a   :  { %v413_v51 = vpop.f32.mrf.mxu3 }
 0x12b   :  { %v414_v52 = vadd.f32 %v670_v50, %v413_v51 }
 0x12c   :  { %v439_v53 = vpop.f32.mrf.mxu1 }
 0x12d   :  { %v427_v54 = vadd.f32 %v426_v49, %v414_v52  ;;  %v428_v55 = vpop.f32.mrf.mxu0 }
 0x12f   :  { %v440_v56 = vadd.f32 %v439_v53, %v427_v54 }
 0x131   :  { %444 = vst.msk [vmem:[%s922_s5] sm:$0xff] %vm443_vm1, %v440_v56 }
 0x132   :  { %v415_v57 = vpop.f32.mrf.mxu3 }
 0x134   :  { %v441_v58 = vpop.f32.mrf.mxu1 }

</bundles_post_ra>
